<compile_context>
chip_gen: v5e
topology: v5e:2x2
jax: 0.10.0
libtpu: 0.0.40
codegen_flags: <defaults>
</compile_context>

<pallas_src>
import math

import jax
import jax.numpy as jnp
import numpy as np
from jax.experimental import pallas as pl
from jax.experimental.pallas import tpu as pltpu

SQRT3 = math.sqrt(3.0)
SQRT5 = math.sqrt(5.0)
SQRT15 = math.sqrt(15.0)

LMAX = 2
NUM_IRREPS = LMAX + 1          # 0e + 1o + 2e  (each multiplicity 1)
SH_DIM = (LMAX + 1) ** 2       # 9
# irrep index l for each SH component, e3nn order [0 | 1 1 1 | 2 2 2 2 2]
L_OF_COMPONENT = np.array([0, 1, 1, 1, 2, 2, 2, 2, 2], dtype=np.int32)


def _sh_lmax2(x, y, z):
    """e3nn real spherical harmonics up to l=2, 'component' normalization.

    Inputs are components of the *normalized* edge vector, each shape (TE, 1).
    Returns (TE, 9).
    """
    sh0 = jnp.ones_like(x)                                               # l = 0
    sh1 = jnp.concatenate([SQRT3 * x, SQRT3 * y, SQRT3 * z], axis=-1)    # l = 1
    sh2 = jnp.concatenate(                                               # l = 2
        [
            SQRT15 * x * z,
            SQRT15 * x * y,
            SQRT5 * (y * y - 0.5 * (x * x + z * z)),
            SQRT15 * y * z,
            0.5 * SQRT15 * (z * z - x * x),
        ],
        axis=-1,
    )
    return jnp.concatenate([sh0, sh1, sh2], axis=-1)


def _tensor_embed_kernel(vec_ref, inv_ref, w_ref, rep_ref, sh_ref, feat_ref):
    f32 = jnp.float32

    # ---- spherical harmonics of normalized edge vector (VPU + EUP) ----
    vec = vec_ref[...].astype(f32)                 # (TE, 3)
    x = vec[:, 0:1]
    y = vec[:, 1:2]
    z = vec[:, 2:3]
    r2 = x * x + y * y + z * z
    # torch F.normalize: v / max(|v|, 1e-12)  ->  clamp r^2 at 1e-24, rsqrt on EUP
    inv_r = jax.lax.rsqrt(jnp.maximum(r2, 1e-24))
    x = x * inv_r
    y = y * inv_r
    z = z * inv_r

    sh = _sh_lmax2(x, y, z)                        # (TE, 9) f32
    sh_ref[...] = sh.astype(sh_ref.dtype)

    # ---- linear: scalar embedding -> per-component channel weights (MXU, K=C) ----
    # w_ref was expanded host-side to (C, F*9) in 'zui' order (irrep weight replicated
    # over its 2l+1 components), so the matmul output is already aligned with the
    # flattened (F*9) feature layout.
    w_exp = jnp.dot(inv_ref[...].astype(f32), w_ref[...],
                    preferred_element_type=f32)    # (TE, F*9)

    # ---- MakeWeightedChannels ----
    # Replicate sh across the F channel blocks with a tiny K=9 MXU matmul against a
    # host-built 0/1 matrix (column u*9+i has a 1 at row i).  The MXU is otherwise
    # nearly idle here, so this replaces F lane-unaligned concat copies for free.
    sh_rep = jnp.dot(sh, rep_ref[...], preferred_element_type=f32)   # (TE, F*9)

    feat_ref[...] = (w_exp * sh_rep).astype(feat_ref.dtype)


def _round_up(a, b):
    return (a + b - 1) // b * b


def _vmem_capacity_bytes():
    try:
        return int(pltpu.get_tpu_info().vmem_capacity_bytes)
    except Exception:
        return 64 * 1024 * 1024   # conservative (v7x-sized) fallback


def two_body_sh_tensor_embed(edge_vec, edge_invariants, linear_weight, *,
                             num_tensor_features, tile_e=None,
                             feat_dtype=jnp.float32):
    """Pallas wrapper.

    edge_vec:        (E, 3)   float32
    edge_invariants: (E, C)   float32
    linear_weight:   (C, num_tensor_features * NUM_IRREPS)  torch layout (u-major, l-minor)
    tile_e:          edge-tile override; None -> auto (largest that fits the VMEM budget)
    returns: edge_sh (E, 9) float32, edge_features (E, F, 9) feat_dtype
             (pass feat_dtype=jnp.bfloat16 to halve the dominant HBM writeback if the
              consumer tolerates it; compute is always f32.)
    """
    E = edge_vec.shape[0]
    C = edge_invariants.shape[1]
    F = num_tensor_features
    assert linear_weight.shape == (C, F * NUM_IRREPS)

    # Host-side weight expansion: [C, (u, l)] -> [C, (u, i)] with the irrep-l weight
    # replicated across its 2l+1 components ('zui' order, l-index map [0,1,1,1,2,...,2]).
    w3 = jnp.asarray(linear_weight, dtype=jnp.float32).reshape(C, F, NUM_IRREPS)
    w_expanded = w3[:, :, L_OF_COMPONENT].reshape(C, F * SH_DIM)       # (C, F*9)
    # Replication matrix: F horizontal copies of I_9 -> column u*9+i has a 1 at row i.
    rep = jnp.tile(jnp.eye(SH_DIM, dtype=jnp.float32), (1, F))         # (9, F*9)

    # ---- generation-aware VMEM budget ----
    # v7x: 64 MiB physical VMEM -> target ~44 MiB, cap vmem_limit at 48 MiB.
    # v5e/v6e: 128 MiB physical -> target ~96 MiB, cap vmem_limit at 100 MiB.
    small_vmem = _vmem_capacity_bytes() <= 64 * 1024 * 1024
    slack = 4 * 1024 * 1024
    limit_cap = (48 if small_vmem else 100) * 1024 * 1024
    budget = limit_cap - slack

    feat_itemsize = jnp.dtype(feat_dtype).itemsize
    # Per-edge-row VMEM: double-buffered pipelined blocks + single-copy in-kernel f32 temps.
    per_edge = (2 * 4 * 3                              # edge_vec in (2 bufs)
                + 2 * 4 * C                            # edge_invariants in (2 bufs)
                + 2 * 4 * SH_DIM                       # sh out (2 bufs)
                + 2 * feat_itemsize * F * SH_DIM       # feat out (2 bufs)
                + 4 * (SH_DIM + 3 * F * SH_DIM)        # sh, w_exp, sh_rep, pre-cast product
                + 4 * 16)                              # misc small per-row temps
    # Grid-invariant resident blocks (weight + replication matrix), 2 pipeline buffers each.
    resident = 2 * 4 * (C * F * SH_DIM + SH_DIM * F * SH_DIM)
    # NOTE: if C*F is so large that `resident` approaches the budget, add an F-axis grid
    # dimension (weight block (C, F_tile*9), output block (te, F_tile*9)) — not needed here.

    cap = max(8, ((budget - resident) // per_edge) // 8 * 8)
    te = cap if tile_e is None else max(8, (min(int(tile_e), cap) // 8) * 8)
    te = min(te, 16384)
    if E >= 32:
        # Keep >= 4 grid steps so each of v7x's two TensorCores pipelines >= 2 tiles.
        te = min(te, _round_up(pl.cdiv(E, 4), 8))
    else:
        te = min(te, _round_up(E, 8))
    te = max(8, te)

    # Ragged last tile is clipped by Pallas (reads of the invalid region are ignored
    # row-wise, writes beyond E are dropped), so no host-side pad pass is needed.
    grid = (pl.cdiv(E, te),)
    usage = te * per_edge + resident
    vmem_limit = int(min(max(usage + slack, 32 * 1024 * 1024), limit_cap))

    sh, feat_flat = pl.pallas_call(
        _tensor_embed_kernel,
        out_shape=(
            jax.ShapeDtypeStruct((E, SH_DIM), jnp.float32),
            jax.ShapeDtypeStruct((E, F * SH_DIM), feat_dtype),
        ),
        grid_spec=pltpu.PrefetchScalarGridSpec(
            num_scalar_prefetch=0,
            grid=grid,
            in_specs=[
                pl.BlockSpec((te, 3), lambda i: (i, 0)),
                pl.BlockSpec((te, C), lambda i: (i, 0)),
                pl.BlockSpec((C, F * SH_DIM), lambda i: (0, 0)),        # resident weight
                pl.BlockSpec((SH_DIM, F * SH_DIM), lambda i: (0, 0)),   # resident replicate
            ],
            out_specs=[
                pl.BlockSpec((te, SH_DIM), lambda i: (i, 0)),
                pl.BlockSpec((te, F * SH_DIM), lambda i: (i, 0)),       # lane-dense flat feat
            ],
        ),
        compiler_params=pltpu.CompilerParams(
            dimension_semantics=("parallel",),
            vmem_limit_bytes=vmem_limit,
        ),
    )(edge_vec, edge_invariants, w_expanded, rep)

    feat = feat_flat.reshape(E, F, SH_DIM)   # free row-major reshape in the wrapper
    return sh, feat


def _reference(edge_vec, edge_invariants, linear_weight, num_tensor_features):
    """Pure-JAX reference of the same forward pass (for validation only)."""
    v = edge_vec.astype(jnp.float32)
    r = jnp.sqrt(jnp.sum(v * v, axis=-1, keepdims=True))
    u = v / jnp.maximum(r, 1e-12)
    x, y, z = u[:, 0:1], u[:, 1:2], u[:, 2:3]
    sh = _sh_lmax2(x, y, z)
    w = jnp.dot(edge_invariants, linear_weight,
                precision=jax.lax.Precision.HIGHEST)          # (E, F*NL), u-major
    w = w.reshape(-1, num_tensor_features, NUM_IRREPS)
    w_exp = w[:, :, jnp.asarray(L_OF_COMPONENT)]              # (E, F, 9)
    feat = sh[:, None, :] * w_exp
    return sh, feat


if __name__ == "__main__":
    key = jax.random.PRNGKey(0)
    k_pos, k_idx, k_inv, k_w = jax.random.split(key, 4)

    # Small synthetic graph: 10 atoms, 16 edges, scalar embedding dim 8, 16 tensor channels.
    num_atoms = 10
    E = 16
    C_in = 8
    F = 16

    pos = jax.random.normal(k_pos, (num_atoms, 3), dtype=jnp.float32)
    edge_index = jax.random.randint(k_idx, (2, E), 0, num_atoms)
    # with_edge_vectors_(data, with_lengths=False)  -- graph gather kept as plain-JAX glue.
    edge_vec = pos[edge_index[1]] - pos[edge_index[0]]

    edge_invariants = jax.random.normal(k_inv, (E, C_in), dtype=jnp.float32)

    # ScalarMLPFunction (linear only, no bias); forward_weight_init scaling 1/sqrt(C_in)
    # folded into the synthetic parameter. weight_numel = F * NUM_IRREPS.
    # TODO(synk): bias / exact nequip init scheme not reproduced (synthetic deterministic params).
    linear_weight = (jax.random.normal(k_w, (C_in, F * NUM_IRREPS), dtype=jnp.float32)
                     / math.sqrt(C_in))

    sh, feat = two_body_sh_tensor_embed(
        edge_vec, edge_invariants, linear_weight, num_tensor_features=F)
    jax.block_until_ready((sh, feat))

    sh_ref, feat_ref = _reference(edge_vec, edge_invariants, linear_weight, F)
    assert sh.shape == (E, SH_DIM) and feat.shape == (E, F, SH_DIM)
    assert np.allclose(np.asarray(sh), np.asarray(sh_ref), rtol=1e-3, atol=1e-3)
    assert np.allclose(np.asarray(feat), np.asarray(feat_ref), rtol=1e-3, atol=1e-3)

    print("KERNEL_OK")
</pallas_src>

<mosaic_0001>
module attributes {stable_mosaic.version = 11 : i64} {
  func.func @_tensor_embed_kernel(%arg0: i32, %arg1: memref<16x3xf32, #tpu.memory_space<vmem>>, %arg2: memref<16x8xf32, #tpu.memory_space<vmem>>, %arg3: memref<8x144xf32, #tpu.memory_space<vmem>>, %arg4: memref<9x144xf32, #tpu.memory_space<vmem>>, %arg5: memref<16x9xf32, #tpu.memory_space<vmem>>, %arg6: memref<16x144xf32, #tpu.memory_space<vmem>>) attributes {dimension_semantics = [#tpu.dimension_semantics<parallel>], iteration_bounds = array<i64: 1>, scalar_prefetch = 0 : i64, scratch_operands = 0 : i64, tpu.core_type = #tpu.core_type<tc>, window_params = [{transform_indices = @transform_0, window_bounds = array<i64: 16, 3>}, {transform_indices = @transform_1, window_bounds = array<i64: 16, 8>}, {pipeline_mode = #tpu.pipeline_mode<synchronous>, transform_indices = @transform_2, window_bounds = array<i64: 8, 144>}, {pipeline_mode = #tpu.pipeline_mode<synchronous>, transform_indices = @transform_3, window_bounds = array<i64: 9, 144>}, {transform_indices = @transform_4, window_bounds = array<i64: 16, 9>}, {transform_indices = @transform_5, window_bounds = array<i64: 16, 144>}]} {
    %c0 = arith.constant 0 : index
    %c0_0 = arith.constant 0 : index
    %0 = vector.load %arg1[%c0, %c0_0] : memref<16x3xf32, #tpu.memory_space<vmem>>, vector<16x3xf32>
    %1 = vector.extract_strided_slice %0 {offsets = [0, 0], sizes = [16, 1], strides = [1, 1]} : vector<16x3xf32> to vector<16x1xf32>
    %2 = vector.extract_strided_slice %0 {offsets = [0, 1], sizes = [16, 1], strides = [1, 1]} : vector<16x3xf32> to vector<16x1xf32>
    %3 = vector.extract_strided_slice %0 {offsets = [0, 2], sizes = [16, 1], strides = [1, 1]} : vector<16x3xf32> to vector<16x1xf32>
    %4 = arith.mulf %1, %1 : vector<16x1xf32>
    %5 = arith.mulf %2, %2 : vector<16x1xf32>
    %6 = arith.addf %4, %5 : vector<16x1xf32>
    %7 = arith.mulf %3, %3 : vector<16x1xf32>
    %8 = arith.addf %6, %7 : vector<16x1xf32>
    %cst = arith.constant 1.000000e-24 : f32
    %9 = vector.broadcast %cst : f32 to vector<16x1xf32>
    %10 = arith.maximumf %8, %9 : vector<16x1xf32>
    %11 = math.rsqrt %10 : vector<16x1xf32>
    %12 = arith.mulf %1, %11 : vector<16x1xf32>
    %13 = arith.mulf %2, %11 : vector<16x1xf32>
    %14 = arith.mulf %3, %11 : vector<16x1xf32>
    %cst_1 = arith.constant 1.000000e+00 : f32
    %15 = vector.broadcast %cst_1 : f32 to vector<16x1xf32>
    %cst_2 = arith.constant 1.73205078 : f32
    %16 = vector.broadcast %cst_2 : f32 to vector<16x1xf32>
    %17 = arith.mulf %16, %12 : vector<16x1xf32>
    %cst_3 = arith.constant 1.73205078 : f32
    %18 = vector.broadcast %cst_3 : f32 to vector<16x1xf32>
    %19 = arith.mulf %18, %13 : vector<16x1xf32>
    %cst_4 = arith.constant 1.73205078 : f32
    %20 = vector.broadcast %cst_4 : f32 to vector<16x1xf32>
    %21 = arith.mulf %20, %14 : vector<16x1xf32>
    %22 = tpu.concatenate %17, %19, %21 in 1 : vector<16x1xf32>, vector<16x1xf32>, vector<16x1xf32> -> vector<16x3xf32>
    %cst_5 = arith.constant 3.87298346 : f32
    %23 = vector.broadcast %cst_5 : f32 to vector<16x1xf32>
    %24 = arith.mulf %23, %12 : vector<16x1xf32>
    %25 = arith.mulf %24, %14 : vector<16x1xf32>
    %cst_6 = arith.constant 3.87298346 : f32
    %26 = vector.broadcast %cst_6 : f32 to vector<16x1xf32>
    %27 = arith.mulf %26, %12 : vector<16x1xf32>
    %28 = arith.mulf %27, %13 : vector<16x1xf32>
    %29 = arith.mulf %13, %13 : vector<16x1xf32>
    %30 = arith.mulf %12, %12 : vector<16x1xf32>
    %31 = arith.mulf %14, %14 : vector<16x1xf32>
    %32 = arith.addf %30, %31 : vector<16x1xf32>
    %cst_7 = arith.constant 5.000000e-01 : f32
    %33 = vector.broadcast %cst_7 : f32 to vector<16x1xf32>
    %34 = arith.mulf %33, %32 : vector<16x1xf32>
    %35 = arith.subf %29, %34 : vector<16x1xf32>
    %cst_8 = arith.constant 2.23606801 : f32
    %36 = vector.broadcast %cst_8 : f32 to vector<16x1xf32>
    %37 = arith.mulf %36, %35 : vector<16x1xf32>
    %cst_9 = arith.constant 3.87298346 : f32
    %38 = vector.broadcast %cst_9 : f32 to vector<16x1xf32>
    %39 = arith.mulf %38, %13 : vector<16x1xf32>
    %40 = arith.mulf %39, %14 : vector<16x1xf32>
    %41 = arith.mulf %14, %14 : vector<16x1xf32>
    %42 = arith.mulf %12, %12 : vector<16x1xf32>
    %43 = arith.subf %41, %42 : vector<16x1xf32>
    %cst_10 = arith.constant 1.93649173 : f32
    %44 = vector.broadcast %cst_10 : f32 to vector<16x1xf32>
    %45 = arith.mulf %44, %43 : vector<16x1xf32>
    %46 = tpu.concatenate %25, %28, %37, %40, %45 in 1 : vector<16x1xf32>, vector<16x1xf32>, vector<16x1xf32>, vector<16x1xf32>, vector<16x1xf32> -> vector<16x5xf32>
    %47 = tpu.concatenate %15, %22, %46 in 1 : vector<16x1xf32>, vector<16x3xf32>, vector<16x5xf32> -> vector<16x9xf32>
    %c0_11 = arith.constant 0 : index
    %c0_12 = arith.constant 0 : index
    %48 = vector.load %arg5[%c0_11, %c0_12] : memref<16x9xf32, #tpu.memory_space<vmem>>, vector<16x9xf32>
    tpu.vector_store %arg5[%c0_11, %c0_12], %47 {strides = array<i32>} : memref<16x9xf32, #tpu.memory_space<vmem>>, vector<16x9xf32>,
    %c0_13 = arith.constant 0 : index
    %c0_14 = arith.constant 0 : index
    %49 = vector.load %arg2[%c0_13, %c0_14] : memref<16x8xf32, #tpu.memory_space<vmem>>, vector<16x8xf32>
    %c0_15 = arith.constant 0 : index
    %c0_16 = arith.constant 0 : index
    %50 = vector.load %arg3[%c0_15, %c0_16] : memref<8x144xf32, #tpu.memory_space<vmem>>, vector<8x144xf32>
    %cst_17 = arith.constant dense<0.000000e+00> : vector<16x144xf32>
    %51 = tpu.matmul %49, %50, %cst_17 {dimension_numbers = #tpu.dot_dimension_numbers<[1], [0], [0], [1], [0, 0, 1, 1], [], []>} : vector<16x8xf32>, vector<8x144xf32>, vector<16x144xf32> -> vector<16x144xf32>
    %c0_18 = arith.constant 0 : index
    %c0_19 = arith.constant 0 : index
    %52 = vector.load %arg4[%c0_18, %c0_19] : memref<9x144xf32, #tpu.memory_space<vmem>>, vector<9x144xf32>
    %cst_20 = arith.constant dense<0.000000e+00> : vector<16x144xf32>
    %53 = tpu.matmul %47, %52, %cst_20 {dimension_numbers = #tpu.dot_dimension_numbers<[1], [0], [0], [1], [0, 0, 1, 1], [], []>} : vector<16x9xf32>, vector<9x144xf32>, vector<16x144xf32> -> vector<16x144xf32>
    %54 = arith.mulf %51, %53 : vector<16x144xf32>
    %c0_21 = arith.constant 0 : index
    %c0_22 = arith.constant 0 : index
    %55 = vector.load %arg6[%c0_21, %c0_22] : memref<16x144xf32, #tpu.memory_space<vmem>>, vector<16x144xf32>
    tpu.vector_store %arg6[%c0_21, %c0_22], %54 {strides = array<i32>} : memref<16x144xf32, #tpu.memory_space<vmem>>, vector<16x144xf32>,
    return
  }
  func.func @transform_0(%arg0: i32) -> (i32, i32) {
    %c0_i32 = arith.constant 0 : i32
    %c0_i32_0 = arith.constant 0 : i32
    return %arg0, %c0_i32 : i32, i32
  }
  func.func @transform_1(%arg0: i32) -> (i32, i32) {
    %c0_i32 = arith.constant 0 : i32
    %c0_i32_0 = arith.constant 0 : i32
    return %arg0, %c0_i32 : i32, i32
  }
  func.func @transform_2(%arg0: i32) -> (i32, i32) {
    %c0_i32 = arith.constant 0 : i32
    %c0_i32_0 = arith.constant 0 : i32
    %c0_i32_1 = arith.constant 0 : i32
    return %c0_i32, %c0_i32_0 : i32, i32
  }
  func.func @transform_3(%arg0: i32) -> (i32, i32) {
    %c0_i32 = arith.constant 0 : i32
    %c0_i32_0 = arith.constant 0 : i32
    %c0_i32_1 = arith.constant 0 : i32
    return %c0_i32, %c0_i32_0 : i32, i32
  }
  func.func @transform_4(%arg0: i32) -> (i32, i32) {
    %c0_i32 = arith.constant 0 : i32
    %c0_i32_0 = arith.constant 0 : i32
    return %arg0, %c0_i32 : i32, i32
  }
  func.func @transform_5(%arg0: i32) -> (i32, i32) {
    %c0_i32 = arith.constant 0 : i32
    %c0_i32_0 = arith.constant 0 : i32
    return %arg0, %c0_i32 : i32, i32
  }
}

</mosaic_0001>

<bundles_post_ra>
// kernel: tpu_custom_call.1
= control target key start
LH: loop header
LB: loop body
LE: loop exit
PB: predicated region body
PF: predicated region fallthrough
CT: control target
= control target key end

     0   :  { %11 = vsyncpa [#allocation3], 0  ;;  %s665_s0 = inlined_call_operand.vmem [shape: f32[16,3], index: 0, kind: input, shape index: {}]   ;;  %s666_s1 = inlined_call_operand.vmem [shape: f32[16,8], index: 1, kind: input, shape index: {}]   ;;  %s667_s2 = inlined_call_operand.hbm [shape: f32[8,144], index: 2, kind: input, shape index: {}]   ;;  %s668_s3 = inlined_call_operand.vmem [shape: f32[9,144], index: 3, kind: input, shape index: {}]   ;;  %s669_s4 = inlined_call_operand.hbm [shape: f32[16,9], index: 4, kind: output, shape index: {0}]   ;;  %s670_s5 = inlined_call_operand.hbm [shape: f32[16,144], index: 5, kind: output, shape index: {1}]  }
   0x1   :  { %12 = vsyncpa [#allocation4], 0 }
   0x2   :  { %13 = vsyncpa [#allocation7], 0  ;;  %s23_s20 = sshll.u32 %s667_s2, 4  ;;  %s520_s21 = smov [#allocation2]   ;;  %s24_s20 = int_to_ptr.hbm [resolvable:$true] %s23_s20 }
   0x3   :  { %s25_s22 = sshll.u32 %s520_s21, 4  ;;  %s26_s22 = int_to_ptr.vmem [resolvable:$true] %s25_s22 }
   0x4   :  { %28 = dma.hbm_to_vmem [thread:$0]  %s24_s20, 256, %s26_s22, [#allocation3]  }
   0x5   :  { %514 = dma.done.wait [#allocation3], 256  }
   0x6   :  { %515 = vsyncadd [#allocation3], 4294967040  ;;  %v35_v0 = vld [vmem:[%s665_s0] sm:$0xff]  ;;  %v571_v1 = vld [vmem:[%s665_s0 + $0x8] sm:$0xff]  ;;  %s521_s2 = smov 127   ;;  %s522_s27 = smov 126  }
   0x7   :  { %v37_v2 = vmul.f32 %v35_v0, %v35_v0  ;;  %v38_v3 = vmul.f32 %v571_v1, %v571_v1  ;;  %s523_s0 = smov 1   ;;  %s524_s28 = smov 2   ;;  %vm105_vm6 = vcmask 7168   ;;  %vm108_vm7 = vcmask 15360  }
   0x8   :  { %vm317_vm8 = vcmask 1040384   ;;  %vm221_vm9 = vcmask 23552   ;;  %vm224_vm10 = vcmask 31744   ;;  %s525_s8 = smov 4   ;;  %vm254_vm11 = vcmask 64512   ;;  %s526_s16 = smov [#allocation5]  }
   0x9   :  { %41 = vrot.lane.b32.xlu0 %v37_v2, %s521_s2  ;;  %43 = vrot.lane.b32.xlu1 %v38_v3, %s521_s2  ;;  %vm247_vm12 = vcmask 72704   ;;  %s383_s17 = sshll.u32 %s526_s16, 4  ;;  %s527_s20 = smov 128   ;;  %vm375_vm13 = vcmask 130048   ;;  %s384_s17 = int_to_ptr.vmem [resolvable:$true] %s383_s17 }
   0xa   :  { %s528_s21 = smov 8   ;;  %s529_s22 = smov [#allocation6]  }
   0xb   :  { %s396_s23 = sshll.u32 %s529_s22, 4  ;;  %s398_s25 = sshll.u32 %s670_s5, 4  ;;  %s397_s23 = int_to_ptr.vmem [resolvable:$true] %s396_s23  ;;  %s399_s25 = int_to_ptr.hbm [resolvable:$true] %s398_s25 }
   0xc   :  { %s530_s26 = smov 256  }
  0x11   :  { %49 = vrot.lane.b32.xlu0 %v37_v2, %s522_s27  ;;  %51 = vrot.lane.b32.xlu1 %v38_v3, %s522_s27 }
  0x7b   :  { %v42_v4 = vpop.permute.xlu0 %41  ;;  %v44_v5 = vpop.permute.xlu1 %43 }
  0x7c   :  { %v48_v6 = vadd.f32 %v44_v5, %v38_v3  ;;  %v47_v7 = vadd.f32 %v42_v4, %v37_v2 }
  0x83   :  { %v50_v8 = vpop.permute.xlu0 %49  ;;  %v52_v9 = vpop.permute.xlu1 %51 }
  0x84   :  { %v55_v10 = vadd.f32 %v50_v8, %v47_v7  ;;  %v56_v11 = vadd.f32 %v52_v9, %v48_v6 }
  0x86   :  { %v57_v12 = vmax.f32 %v55_v10, 1e-24  ;;  %v58_v13 = vmax.f32 %v56_v11, 1e-24 }
  0x88   :  { %438 = vrsqrt.f32 %v57_v12  ;;  %vm65_vm1 = vweird.f32 %v57_v12  ;;  %vm75_vm3 = vweird.f32 %v58_v13 }
  0x89   :  { %440 = vrsqrt.f32 %v58_v13 }
  0x8e   :  { %v439_v14 = vpop.eup %438 }
  0x8f   :  { %v441_v15 = vpop.eup %440  ;;  %v60_v16 = vmul.f32 %v439_v14, %v57_v12  ;;  %vm66_vm0 = vweird.f32 %v439_v14 }
  0x90   :  { %v70_v17 = vmul.f32 %v441_v15, %v58_v13  ;;  %vm67_vm2 = vmor %vm65_vm1, %vm66_vm0  ;;  %vm76_vm4 = vweird.f32 %v441_v15 }
  0x91   :  { %v61_v18 = vmul.f32 %v439_v14, %v60_v16  ;;  %vm77_vm5 = vmor %vm75_vm3, %vm76_vm4 }
  0x92   :  { %v71_v19 = vmul.f32 %v441_v15, %v70_v17 }
  0x93   :  { %v62_v20 = vmul.f32 0.5, %v61_v18 }
  0x94   :  { %v72_v21 = vmul.f32 0.5, %v71_v19 }
  0x95   :  { %v63_v22 = vsub.f32 1.5, %v62_v20 }
  0x96   :  { %v73_v24 = vsub.f32 1.5, %v72_v21 }
  0x97   :  { %v64_v23 = vmul.f32 %v439_v14, %v63_v22  ;;  %v309_v22 = vld [vmem:[%s668_s3 + $0x10] sm:$0x1] }
  0x98   :  { %v74_v26 = vmul.f32 %v441_v15, %v73_v24  ;;  %420 = vmatpush.msk.msra.mxu2 %vm317_vm8, %v309_v22 }
  0x99   :  { %v68_v25 = vsel %vm67_vm2, %v439_v14, %v64_v23  ;;  %v310_v23 = vld [vmem:[%s668_s3 + $0x18] sm:$0x1] }
  0x9a   :  { %83 = vrot.lane.b32.xlu1 %v68_v25, %s523_s0  ;;  %91 = vrot.lane.b32.xlu2 %v68_v25, %s524_s28  ;;  %v78_v27 = vsel %vm77_vm5, %v441_v15, %v74_v26  ;;  %v79_v34 = vmul.f32 %v68_v25, %v35_v0 }
  0x9b   :  { %v80_v41 = vmul.f32 %v78_v27, %v571_v1  ;;  %423 = vmatpush.msk.msra.mxu3 %vm317_vm8, %v310_v23 }
  0x9c   :  { %v135_v35 = vmul.f32 %v79_v34, %v79_v34  ;;  %v99_v38 = vmul.f32 1.7320508, %v79_v34  ;;  %v111_v55 = vmul.f32 3.8729835, %v79_v34 }
  0x9d   :  { %v136_v42 = vmul.f32 %v80_v41, %v80_v41  ;;  %v100_v51 = vmul.f32 1.7320508, %v80_v41  ;;  %v112_v10 = vmul.f32 3.8729835, %v80_v41 }
  0xa2   :  { %93 = vrot.lane.b32.xlu2 %v78_v27, %s524_s28 }
  0xf4   :  { %v92_v28 = vpop.permute.xlu2 %91 }
  0xf5   :  { %v97_v29 = vmul.f32 %v92_v28, %v35_v0 }
  0xf7   :  { %v137_v30 = vmul.f32 %v97_v29, %v97_v29 }
  0xf9   :  { %141 = vrot.lane.b32.xlu0 %v137_v30, %s522_s27 }
  0xfc   :  { %v94_v31 = vpop.permute.xlu2 %93 }
  0xfd   :  { %v584_v32 = vmul.f32 %v94_v31, %v571_v1 }
  0xff   :  { %v588_v33 = vmul.f32 %v584_v32, %v584_v32  ;;  %v104_v18 = vmul.f32 1.7320508, %v584_v32 }
 0x101   :  { %85 = vrot.lane.b32.xlu0 %v78_v27, %s523_s0  ;;  %143 = vrot.lane.b32.xlu2 %v588_v33, %s522_s27 }
 0x109   :  { %175 = vrot.lane.b32.xlu0 %v135_v35, %s524_s28 }
 0x10c   :  { %v84_v36 = vpop.permute.xlu1 %83 }
 0x10d   :  { %v89_v37 = vmul.f32 %v84_v36, %v35_v0  ;;  %v103_v0 = vmul.f32 1.7320508, %v97_v29 }
 0x10f   :  { %125 = vrot.lane.b32.xlu2 %v89_v37, %s521_s2  ;;  %v101_v39 = vmul.f32 1.7320508, %v89_v37  ;;  %v133_v2 = vmul.f32 %v89_v37, %v89_v37  ;;  %v163_v6 = vmul.f32 3.8729835, %v89_v37 }
 0x111   :  { %v106_v40 = vsel %vm105_vm6, %v99_v38, %v101_v39 }
 0x15b   :  { %v144_v43 = vpop.permute.xlu2 %143 }
 0x15c   :  { %v148_v44 = vadd.f32 %v144_v43, %v136_v42  ;;  %v308_v43 = vld [vmem:[%s668_s3 + $0x8] sm:$0xff] }
 0x15d   :  { %362 = vmatpush.msra.mxu3 %v308_v43 }
 0x15e   :  { %v150_v45 = vmul.f32 0.5, %v148_v44  ;;  %v252_v44 = vld [vmem:[#allocation2] sm:$0xff] }
 0x15f   :  { %276 = vmatpush.msra.mxu0 %v252_v44 }
 0x160   :  { %155 = vrot.lane.b32.xlu2 %v150_v45, %s523_s0  ;;  %v253_v45 = vld [vmem:[#allocation2 + $0x8] sm:$0xff] }
 0x161   :  { %299 = vmatpush.msra.mxu1 %v253_v45 }
 0x168   :  { %167 = vrot.lane.b32.xlu2 %v584_v32, %s521_s2 }
 0x169   :  { %v126_v54 = vpop.permute.xlu2 %125 }
 0x16a   :  { %v131_v56 = vmul.f32 %v126_v54, %v111_v55 }
 0x16b   :  { %v142_v46 = vpop.permute.xlu0 %141 }
 0x16c   :  { %v147_v47 = vadd.f32 %v142_v46, %v135_v35  ;;  %v250_v46 = vld [vmem:[%s666_s1] sm:$0xff] }
 0x16d   :  { %416 = vmatmul.msk.f32.vlgmr.msra.gmra.mxu0 %vm254_vm11, %v250_v46  ;;  %418 = vmatmul.msk.f32.vlgmr.msra.gmra.mxu1 %vm254_vm11, %v250_v46 }
 0x16e   :  { %v149_v48 = vmul.f32 0.5, %v147_v47 }
 0x170   :  { %153 = vrot.lane.b32.xlu1 %v149_v48, %s523_s0 }
 0x173   :  { %v86_v49 = vpop.permute.xlu0 %85 }
 0x174   :  { %v90_v50 = vmul.f32 %v86_v49, %v571_v1  ;;  %v109_v1 = vsel %vm108_vm7, %v106_v40, %v103_v0 }
 0x176   :  { %127 = vrot.lane.b32.xlu0 %v90_v50, %s521_s2  ;;  %v102_v52 = vmul.f32 1.7320508, %v90_v50  ;;  %v134_v60 = vmul.f32 %v90_v50, %v90_v50  ;;  %v164_v12 = vmul.f32 3.8729835, %v90_v50 }
 0x178   :  { %165 = vrot.lane.b32.xlu1 %v97_v29, %s521_s2  ;;  %v107_v53 = vsel %vm105_vm6, %v100_v51, %v102_v52  ;;  %v251_v51 = vld [vmem:[%s666_s1 + $0x8] sm:$0xff]  ;;  %s385_s1 = sshll.u32 %s669_s4, 4  ;;  %s531_s2 = smov 16   ;;  %s386_s1 = int_to_ptr.hbm [resolvable:$true] %s385_s1 }
 0x179   :  { %v110_v19 = vsel %vm108_vm7, %v107_v53, %v104_v18  ;;  %417 = vmatmul.msk.f32.gmra.mxu0 %vm254_vm11, %v251_v51  ;;  %419 = vmatmul.msk.f32.gmra.mxu1 %vm254_vm11, %v251_v51 }
 0x17b   :  { %v176_v57 = vpop.permute.xlu0 %175 }
 0x17c   :  { %v181_v58 = vsub.f32 %v137_v30, %v176_v57 }
 0x17e   :  { %115 = vrot.lane.b32.xlu0 %v97_v29, %s522_s27  ;;  %v183_v59 = vmul.f32 1.9364917, %v181_v58 }
 0x180   :  { %177 = vrot.lane.b32.xlu1 %v136_v42, %s524_s28  ;;  %v307_v42 = vld [vmem:[%s668_s3] sm:$0xff] }
 0x181   :  { %339 = vmatpush.msra.mxu2 %v307_v42 }
 0x188   :  { %187 = vrot.lane.b32.xlu1 %v131_v56, %s523_s0 }
 0x190   :  { %211 = vrot.lane.b32.xlu1 %v183_v59, %s524_s28 }
 0x1ba   :  { %v156_v61 = vpop.permute.xlu2 %155 }
 0x1bb   :  { %v160_v62 = vsub.f32 %v134_v60, %v156_v61 }
 0x1bd   :  { %v162_v63 = vmul.f32 2.236068, %v160_v62 }
 0x1bf   :  { %197 = vrot.lane.b32.xlu1 %v162_v63, %s523_s0 }
 0x1c2   :  { %v168_v11 = vpop.permute.xlu2 %167 }
 0x1c3   :  { %v172_v15 = vmul.f32 %v168_v11, %v164_v12 }
 0x1c7   :  { %229 = vrot.lane.b32.xlu1 %v109_v1, %s523_s0 }
 0x1e2   :  { %v154_v3 = vpop.permute.xlu1 %153 }
 0x1e3   :  { %v159_v4 = vsub.f32 %v133_v2, %v154_v3 }
 0x1e5   :  { %v161_v5 = vmul.f32 2.236068, %v159_v4 }
 0x1e7   :  { %195 = vrot.lane.b32.xlu2 %v161_v5, %s523_s0 }
 0x1e8   :  { %v128_v9 = vpop.permute.xlu0 %127 }
 0x1e9   :  { %v132_v13 = vmul.f32 %v128_v9, %v112_v10 }
 0x1ea   :  { %v166_v7 = vpop.permute.xlu1 %165  ;;  %v278_v56 = vpop.f32.mrf.mxu0 }
 0x1eb   :  { %v171_v8 = vmul.f32 %v166_v7, %v163_v6  ;;  %v301_v57 = vpop.f32.mrf.mxu1 }
 0x1ed   :  { %203 = vrot.lane.b32.xlu0 %v171_v8, %s524_s28 }
 0x1ef   :  { %117 = vrot.lane.b32.xlu2 %v584_v32, %s522_s27 }
 0x1f0   :  { %v116_v21 = vpop.permute.xlu0 %115 }
 0x1f1   :  { %v121_v25 = vmul.f32 %v116_v21, %v111_v55 }
 0x1f2   :  { %v178_v14 = vpop.permute.xlu1 %177 }
 0x1f3   :  { %v182_v16 = vsub.f32 %v588_v33, %v178_v14 }
 0x1f5   :  { %189 = vrot.lane.b32.xlu0 %v132_v13, %s523_s0  ;;  %v184_v17 = vmul.f32 1.9364917, %v182_v16 }
 0x1f6   :  { %v281_v62 = vpop.f32.mrf.mxu0  ;;  %v304_v63 = vpop.f32.mrf.mxu1 }
 0x1f7   :  { %205 = vrot.lane.b32.xlu2 %v172_v15, %s524_s28 }
 0x1fa   :  { %v188_v20 = vpop.permute.xlu1 %187 }
 0x1fb   :  { %v217_v26 = vsel %vm105_vm6, %v121_v25, %v188_v20 }
 0x1fd   :  { %213 = vrot.lane.b32.xlu0 %v184_v17, %s524_s28 }
 0x202   :  { %v212_v29 = vpop.permute.xlu1 %211 }
 0x205   :  { %231 = vrot.lane.b32.xlu0 %v110_v19, %s523_s0 }
 0x231   :  { %v198_v36 = vpop.permute.xlu1 %197 }
 0x239   :  { %v230_v47 = vpop.permute.xlu1 %229 }
 0x23a   :  { %v243_v48 = vsel %vm105_vm6, 1.0, %v230_v47 }
 0x241   :  { %v196_v24 = vpop.permute.xlu2 %195 }
 0x242   :  { %v219_v27 = vsel %vm108_vm7, %v217_v26, %v196_v24 }
 0x249   :  { %v118_v32 = vpop.permute.xlu2 %117 }
 0x24a   :  { %v122_v33 = vmul.f32 %v118_v32, %v112_v10 }
 0x251   :  { %v206_v38 = vpop.permute.xlu2 %205 }
 0x25f   :  { %v204_v28 = vpop.permute.xlu0 %203 }
 0x260   :  { %v222_v30 = vsel %vm221_vm9, %v219_v27, %v204_v28 }
 0x261   :  { %v225_v31 = vsel %vm224_vm10, %v222_v30, %v212_v29 }
 0x262   :  { %237 = vrot.lane.b32.xlu2 %v225_v31, %s525_s8 }
 0x267   :  { %v190_v34 = vpop.permute.xlu0 %189 }
 0x268   :  { %v218_v35 = vsel %vm105_vm6, %v122_v33, %v190_v34 }
 0x269   :  { %v220_v37 = vsel %vm108_vm7, %v218_v35, %v198_v36 }
 0x26a   :  { %v223_v40 = vsel %vm221_vm9, %v220_v37, %v206_v38 }
 0x26f   :  { %v214_v39 = vpop.permute.xlu0 %213 }
 0x270   :  { %v226_v41 = vsel %vm224_vm10, %v223_v40, %v214_v39 }
 0x271   :  { %239 = vrot.lane.b32.xlu1 %v226_v41, %s525_s8 }
 0x277   :  { %v232_v52 = vpop.permute.xlu0 %231 }
 0x278   :  { %v244_v53 = vsel %vm105_vm6, 1.0, %v232_v52 }
 0x2bc   :  { %v238_v49 = vpop.permute.xlu2 %237 }
 0x2bd   :  { %v245_v50 = vsel %vm224_vm10, %v243_v48, %v238_v49 }
 0x2be   :  { %248 = vst.msk [vmem:[#allocation5] sm:$0xff] %vm247_vm12, %v245_v50  ;;  %421 = vmatmul.msk.f32.vlgmr.msra.gmra.mxu2 %vm247_vm12, %v245_v50  ;;  %424 = vmatmul.msk.f32.vlgmr.msra.gmra.mxu3 %vm247_vm12, %v245_v50 }
 0x2e3   :  { %v240_v54 = vpop.permute.xlu1 %239 }
 0x2e4   :  { %v246_v55 = vsel %vm224_vm10, %v244_v53, %v240_v54 }
 0x2e5   :  { %249 = vst.msk [vmem:[#allocation5 + $0x8] sm:$0xff] %vm247_vm12, %v246_v55  ;;  %422 = vmatmul.msk.f32.gmra.mxu2 %vm247_vm12, %v246_v55  ;;  %425 = vmatmul.msk.f32.gmra.mxu3 %vm247_vm12, %v246_v55 }
 0x2e6   :  { %391 = dma.vmem_to_hbm [thread:$0]  %s384_s17, 256, %s386_s1, [#allocation4], %s527_s20, %s527_s20, %s528_s21  }
 0x341   :  { %v341_v58 = vpop.f32.mrf.mxu2  ;;  %v364_v59 = vpop.f32.mrf.mxu3 }
 0x342   :  { %v370_v60 = vmul.f32 %v341_v58, %v278_v56  ;;  %v371_v61 = vmul.f32 %v364_v59, %v301_v57 }
 0x344   :  { %374 = vst [vmem:[#allocation6] sm:$0xff] %v370_v60 }
 0x345   :  { %376 = vst.msk [vmem:[#allocation6 + $0x8] sm:$0xff] %vm375_vm13, %v371_v61 }
 0x368   :  { %v344_v0 = vpop.f32.mrf.mxu2  ;;  %v367_v1 = vpop.f32.mrf.mxu3 }
 0x369   :  { %v372_v2 = vmul.f32 %v344_v0, %v281_v62  ;;  %v373_v3 = vmul.f32 %v367_v1, %v304_v63 }
 0x36b   :  { %377 = vst [vmem:[#allocation6 + $0x10] sm:$0xff] %v372_v2 }
 0x36c   :  { %378 = vst.msk [vmem:[#allocation6 + $0x18] sm:$0xff] %vm375_vm13, %v373_v3 }
 0x36d   :  { %404 = dma.vmem_to_hbm [thread:$0]  %s397_s23, 512, %s399_s25, [#allocation7], %s530_s26, %s530_s26, %s531_s2  }
 0x36e   :  { %516 = dma.done.wait [#allocation4], 256  }
 0x36f   :  { %517 = vsyncadd [#allocation4], 4294967040 }
 0x370   :  { %518 = dma.done.wait [#allocation7], 512  }
 0x371   :  { %519 = vsyncadd [#allocation7], 4294966784 }
 0x372   :  { %413 = vsyncpa [#allocation3], 1 }
 0x373   :  { %414 = vsyncpa [#allocation4], 1 }
 0x374   :  { %415 = vsyncpa [#allocation7], 1 }

</bundles_post_ra>
